<compile_context>
chip_gen: v7x
topology: tpu7x:2x2x1
jax: 0.10.0
libtpu: 0.0.40
codegen_flags: <defaults>
</compile_context>

<pallas_src>
import functools
import math

import jax
import jax.numpy as jnp
import numpy as np
from jax.experimental import pallas as pl
from jax.experimental.pallas import tpu as pltpu


REMAIN_BIT = 12
GROUP_SIZE = 256


def _align_quant_kernel(x_ref, o_ref, *, remain_bit: int):
    # One block row == one quantization group (grouping done as a free
    # contiguous reshape in the wrapper; no in-kernel relayout copies).
    x = x_ref[...]                                                  # native dtype

    # Per-group max|x| in the native dtype (abs/max are exact in bf16/f16/f32);
    # only the (rows, 1) column of maxima is promoted to f32 -> small f32 temps.
    group_max = jnp.max(jnp.abs(x), axis=-1, keepdims=True).astype(jnp.float32)

    # Exact floor(log2(group_max + 1e-30)) via exponent-bit extraction.
    # group_max + 1e-30 is always a positive *normal* f32, so its unbiased
    # exponent IS floor(log2(.)) exactly -- no EUP transcendentals.
    gm = group_max + jnp.float32(1e-30)
    max_exp = ((pltpu.bitcast(gm, jnp.int32) >> 23) & 0xFF) - 127   # (rows, 1) int32

    # Build 2^(t - max_exp) and 2^(max_exp - t) as f32 bit patterns (VPU int ops).
    # For fp16/bf16/fp32-range inputs both biased exponents stay normal.
    t = remain_bit - 2
    pre = pltpu.bitcast((t - max_exp + 127) << 23, jnp.float32)     # 2^(t - max_exp)
    post = pltpu.bitcast((max_exp - t + 127) << 23, jnp.float32)    # 2^(max_exp - t)

    # trunc(x * 2^(t-max_exp)) * 2^(max_exp-t)
    #   == sign(x) * floor(|x| * 2^-max_exp * 2^t) / 2^t * 2^max_exp
    q = jnp.trunc(x.astype(jnp.float32) * pre) * post
    o_ref[...] = q.astype(o_ref.dtype)


def _vmem_capacity_bytes() -> int:
    try:
        return int(pltpu.get_tpu_info().vmem_capacity_bytes)
    except Exception:
        return 64 * 1024 * 1024  # conservative default (v7x-sized)


def align_quantize(x, *, group_size: int = GROUP_SIZE, remain_bit: int = REMAIN_BIT,
                   tile_rows: int | None = None):
    """Pallas implementation of AlighQuantizer.forward (weight and activation
    branches do the same grouping along the last dim)."""
    original_shape = x.shape
    d = original_shape[-1]
    if d % group_size != 0:
        raise ValueError("last dim must be divisible by group_size")

    # Free HBM-side flatten: each row is exactly one group.
    rows = int(math.prod(original_shape)) // group_size
    x2 = x.reshape(rows, group_size)

    itemsize = jnp.dtype(x.dtype).itemsize
    sublane = max(8, 32 // itemsize)            # 8 for f32, 16 for bf16/f16

    vmem_cap = _vmem_capacity_bytes()
    if vmem_cap >= 100 * 1024 * 1024:
        # v5e / v6e: 128 MiB physical VMEM -> big blocks, per-step overhead <2%.
        target_bytes = 8 * 1024 * 1024
        vmem_limit = 100 * 1024 * 1024
    else:
        # v7x: 64 MiB VMEM, 3.2 TB/s HBM -> ~4 MiB blocks + 48 MiB scoped limit
        # keep double-buffered in/out plus f32 temps well inside the budget.
        target_bytes = 4 * 1024 * 1024
        vmem_limit = 48 * 1024 * 1024

    if tile_rows is None:
        # Clamp on block bytes (no arbitrary row cap).
        tile_rows = (target_bytes // (group_size * itemsize)) // sublane * sublane
    rows_padded = -(-rows // sublane) * sublane
    tile_rows = max(min(int(tile_rows), rows_padded), sublane)

    total = rows * group_size
    kernel = functools.partial(_align_quant_kernel, remain_bit=remain_bit)

    out = pl.pallas_call(
        kernel,
        out_shape=jax.ShapeDtypeStruct((rows, group_size), x.dtype),
        grid_spec=pltpu.PrefetchScalarGridSpec(
            num_scalar_prefetch=0,
            grid=(pl.cdiv(rows, tile_rows),),     # partial last block handled by Pallas
            in_specs=[pl.BlockSpec((tile_rows, group_size), lambda i: (i, 0))],
            out_specs=pl.BlockSpec((tile_rows, group_size), lambda i: (i, 0)),
        ),
        compiler_params=pltpu.CompilerParams(
            # TODO(synk): on v7x verify via xprof that both TensorCores are busy;
            # if one is idle, switch this axis to pltpu.CORE_PARALLEL.
            dimension_semantics=("parallel",),
            vmem_limit_bytes=vmem_limit,
        ),
        cost_estimate=pl.CostEstimate(
            flops=4 * total,
            transcendentals=0,
            bytes_accessed=2 * total * itemsize,
        ),
    )(x2)

    return out.reshape(original_shape)


def _reference_np(x, *, group_size=GROUP_SIZE, remain_bit=REMAIN_BIT):
    """Host-side float64 reference mirroring the PyTorch module (robust log2)."""
    xs = np.asarray(jax.device_get(x.astype(jnp.float32)), dtype=np.float64)
    shape = xs.shape
    ng = shape[-1] // group_size
    xg = xs.reshape(*shape[:-1], ng, group_size)
    exp = np.floor(np.log2(np.abs(xg) + 1e-30))
    max_exp = exp.max(axis=-1, keepdims=True)
    signs = np.sign(xg)
    mantissa = np.abs(xg) / 2.0 ** exp
    aligned = mantissa * 2.0 ** (-(max_exp - exp))
    scale = 2.0 ** (remain_bit - 2)
    aligned = np.floor(aligned * scale) / scale
    res = signs * aligned * 2.0 ** max_exp
    return res.reshape(shape)


if __name__ == "__main__":
    key = jax.random.PRNGKey(0)
    k1, k2 = jax.random.split(key)

    # AlighQuantizer(remain_bit=12, group_size=256, weight=False, ori_dtype=bfloat16):
    # activation-style input (batch=2, seq=8, hidden=512) -> 2 groups of 256 per row.
    x = jax.random.normal(k1, (2, 8, 512), dtype=jnp.float32).astype(jnp.bfloat16)
    y = jax.block_until_ready(align_quantize(x))
    assert y.shape == x.shape and y.dtype == x.dtype
    y_np = np.asarray(jax.device_get(y.astype(jnp.float32)), dtype=np.float64)
    np.testing.assert_allclose(y_np, _reference_np(x), atol=2e-2, rtol=2e-2)

    # f32 input: 130x512 -> 260 group-rows, tile_rows=16 -> multiple grid steps
    # plus a partial last block.
    x32 = jax.random.normal(k2, (130, 512), dtype=jnp.float32) * 3.0
    y32 = jax.block_until_ready(align_quantize(x32, tile_rows=16))
    assert y32.shape == x32.shape and y32.dtype == x32.dtype
    y32_np = np.asarray(jax.device_get(y32), dtype=np.float64)
    np.testing.assert_allclose(y32_np, _reference_np(x32), atol=1e-6, rtol=1e-6)

    print("KERNEL_OK")
</pallas_src>

<mosaic_0001>
module attributes {stable_mosaic.version = 11 : i64} {
  func.func @_align_quant_kernel(%arg0: i32, %arg1: memref<32x256xbf16, #tpu.memory_space<vmem>>, %arg2: memref<32x256xbf16, #tpu.memory_space<vmem>>) attributes {dimension_semantics = [#tpu.dimension_semantics<parallel>], iteration_bounds = array<i64: 1>, scalar_prefetch = 0 : i64, scratch_operands = 0 : i64, tpu.core_type = #tpu.core_type<tc>, window_params = [{transform_indices = @transform_0, window_bounds = array<i64: 32, 256>}, {transform_indices = @transform_1, window_bounds = array<i64: 32, 256>}]} {
    %c0 = arith.constant 0 : index
    %c0_0 = arith.constant 0 : index
    %0 = vector.load %arg1[%c0, %c0_0] : memref<32x256xbf16, #tpu.memory_space<vmem>>, vector<32x256xbf16>
    %1 = math.absf %0 : vector<32x256xbf16>
    %cst = arith.constant dense<0xFF80> : vector<32xbf16>
    %2 = vector.multi_reduction <maximumf>, %1, %cst [1] : vector<32x256xbf16> to vector<32xbf16>
    %3 = vector.shape_cast %2 : vector<32xbf16> to vector<32x1xbf16>
    %4 = arith.extf %3 : vector<32x1xbf16> to vector<32x1xf32>
    %cst_1 = arith.constant 1.000000e-30 : f32
    %5 = vector.broadcast %cst_1 : f32 to vector<32x1xf32>
    %6 = arith.addf %4, %5 : vector<32x1xf32>
    %7 = tpu.bitcast %6 : vector<32x1xf32> -> vector<32x1xi32>
    %c23_i32 = arith.constant 23 : i32
    %8 = vector.broadcast %c23_i32 : i32 to vector<32x1xi32>
    %9 = arith.shrsi %7, %8 : vector<32x1xi32>
    %c255_i32 = arith.constant 255 : i32
    %10 = vector.broadcast %c255_i32 : i32 to vector<32x1xi32>
    %11 = arith.andi %9, %10 : vector<32x1xi32>
    %c127_i32 = arith.constant 127 : i32
    %12 = vector.broadcast %c127_i32 : i32 to vector<32x1xi32>
    %13 = arith.subi %11, %12 : vector<32x1xi32>
    %c10_i32 = arith.constant 10 : i32
    %14 = vector.broadcast %c10_i32 : i32 to vector<32x1xi32>
    %15 = arith.subi %14, %13 : vector<32x1xi32>
    %c127_i32_2 = arith.constant 127 : i32
    %16 = vector.broadcast %c127_i32_2 : i32 to vector<32x1xi32>
    %17 = arith.addi %15, %16 : vector<32x1xi32>
    %c23_i32_3 = arith.constant 23 : i32
    %18 = vector.broadcast %c23_i32_3 : i32 to vector<32x1xi32>
    %19 = arith.shli %17, %18 : vector<32x1xi32>
    %20 = tpu.bitcast %19 : vector<32x1xi32> -> vector<32x1xf32>
    %c10_i32_4 = arith.constant 10 : i32
    %21 = vector.broadcast %c10_i32_4 : i32 to vector<32x1xi32>
    %22 = arith.subi %13, %21 : vector<32x1xi32>
    %c127_i32_5 = arith.constant 127 : i32
    %23 = vector.broadcast %c127_i32_5 : i32 to vector<32x1xi32>
    %24 = arith.addi %22, %23 : vector<32x1xi32>
    %c23_i32_6 = arith.constant 23 : i32
    %25 = vector.broadcast %c23_i32_6 : i32 to vector<32x1xi32>
    %26 = arith.shli %24, %25 : vector<32x1xi32>
    %27 = tpu.bitcast %26 : vector<32x1xi32> -> vector<32x1xf32>
    %28 = arith.extf %0 : vector<32x256xbf16> to vector<32x256xf32>
    %29 = vector.broadcast %20 : vector<32x1xf32> to vector<32x256xf32>
    %30 = arith.mulf %28, %29 : vector<32x256xf32>
    %cst_7 = arith.constant 0.000000e+00 : f32
    %31 = vector.broadcast %cst_7 : f32 to vector<32x256xf32>
    %32 = arith.cmpf olt, %30, %31 : vector<32x256xf32>
    %33 = math.ceil %30 : vector<32x256xf32>
    %34 = math.floor %30 : vector<32x256xf32>
    %35 = arith.select %32, %33, %34 : vector<32x256xi1>, vector<32x256xf32>
    %36 = vector.broadcast %27 : vector<32x1xf32> to vector<32x256xf32>
    %37 = arith.mulf %35, %36 : vector<32x256xf32>
    %38 = arith.truncf %37 : vector<32x256xf32> to vector<32x256xbf16>
    %c0_8 = arith.constant 0 : index
    %c0_9 = arith.constant 0 : index
    %39 = vector.load %arg2[%c0_8, %c0_9] : memref<32x256xbf16, #tpu.memory_space<vmem>>, vector<32x256xbf16>
    tpu.vector_store %arg2[%c0_8, %c0_9], %38 {strides = array<i32>} : memref<32x256xbf16, #tpu.memory_space<vmem>>, vector<32x256xbf16>,
    return
  }
  func.func @transform_0(%arg0: i32) -> (i32, i32) {
    %c0_i32 = arith.constant 0 : i32
    %c0_i32_0 = arith.constant 0 : i32
    return %arg0, %c0_i32 : i32, i32
  }
  func.func @transform_1(%arg0: i32) -> (i32, i32) {
    %c0_i32 = arith.constant 0 : i32
    %c0_i32_0 = arith.constant 0 : i32
    return %arg0, %c0_i32 : i32, i32
  }
}

</mosaic_0001>

<bundles_post_ra>
// kernel: tpu_custom_call.1
= control target key start
LH: loop header
LB: loop body
LE: loop exit
PB: predicated region body
PF: predicated region fallthrough
CT: control target
= control target key end

     0   :  { %6 = vsyncpa [#allocation3], 0  ;;  %s344_s0 = inlined_call_operand.hbm [shape: bf16[32,256], index: 0, kind: input, shape index: {}]   ;;  %s345_s1 = inlined_call_operand.hbm [shape: bf16[32,256], index: 1, kind: output, shape index: {}]  }
   0x1   :  { %7 = vsyncpa [#allocation4], 0  ;;  %s286_s6 = smov [#allocation2]   ;;  %s238_s10 = scalar_lea.hbm %s344_s0, 512 }
   0x2   :  { %s13_s7 = sshll.u32 %s286_s6, 4  ;;  %p239_p0 = scmp.ne.s32.totalorder %s344_s0, %s238_s10  ;;  %s14_s7 = int_to_ptr.vmem [resolvable:$true] %s13_s7 }
   0x3   :  { %p242_p1 = scmp.lt.u32.totalorder %s238_s10, %s344_s0 }
   0x5   :  { %p244_p2 = pnand %p242_p1, %p239_p0 }
   0x7   :  { %247 = shalt.err (!%p244_p2)
}
   0x8   :  { %s248_s15 = scalar_lea.vmem %s14_s7, 512  ;;  %p253_p4 = scmp.lt.s32.totalorder %s14_s7, %s14_s7 }
   0x9   :  { %p249_p3 = scmp.ne.s32.totalorder %s14_s7, %s248_s15  ;;  %p254_p5 = scmp.lt.s32.totalorder %s248_s15, %s248_s15 }
   0xb   :  { %p255_p6 = por %p254_p5, %p253_p4 }
   0xd   :  { %p256_p7 = pnand %p255_p6, %p249_p3 }
   0xf   :  { %259 = shalt.err (!%p256_p7)
}
  0x10   :  { %s287_s16 = smov 128   ;;  %s288_s17 = smov 8  }
  0x11   :  { %19 = dma.hbm_to_vmem [thread:$0]  %s344_s0, 512, %s14_s7, [#allocation3], %s287_s16, %s287_s16, %s288_s17  }
  0x12   :  { %282 = dma.done.wait [#allocation3], 512  }
  0x13   :  { %283 = vsyncadd [#allocation3], 4294966784  ;;  %v23_v0 = vld [vmem:[#allocation2] sm:$0xff]  ;;  %v24_v1 = vld [vmem:[#allocation2 + $0x8] sm:$0xff]  ;;  %s289_s0 = smov [#allocation5]  }
  0x14   :  { %v315_v2 = vld [vmem:[#allocation2 + $0x10] sm:$0xff]  ;;  %v27_v3 = vand.u32 2147450879, %v23_v0  ;;  %v28_v4 = vand.u32 2147450879, %v24_v1  ;;  %v317_v5 = vld [vmem:[#allocation2 + $0x18] sm:$0xff]  ;;  %v113_v30 = vunpack.c.l.bf16 %v23_v0  ;;  %v114_v31 = vunpack.c.h.bf16 %v23_v0 }
  0x15   :  { %v29_v8 = vand.u32 2147450879, %v315_v2  ;;  %v30_v9 = vand.u32 2147450879, %v317_v5  ;;  %v115_v34 = vunpack.c.l.bf16 %v24_v1  ;;  %v116_v35 = vunpack.c.h.bf16 %v24_v1  ;;  %s202_s20 = sshll.u32 %s289_s0, 4  ;;  %s203_s20 = int_to_ptr.vmem [resolvable:$true] %s202_s20 }
  0x16   :  { %v214_v6 = vcombine.low %v27_v3, %v28_v4  ;;  %v215_v7 = vcombine.high %v27_v3, %v28_v4  ;;  %v117_v44 = vunpack.c.l.bf16 %v315_v2  ;;  %v118_v45 = vunpack.c.h.bf16 %v315_v2  ;;  %s260_s21 = scalar_lea.vmem %s203_s20, 512  ;;  %p265_p9 = scmp.lt.s32.totalorder %s203_s20, %s203_s20 }
  0x17   :  { %v216_v11 = vcombine.low %v29_v8, %v30_v9  ;;  %v217_v12 = vcombine.high %v29_v8, %v30_v9  ;;  %p261_p8 = scmp.ne.s32.totalorder %s203_s20, %s260_s21  ;;  %p266_p10 = scmp.lt.s32.totalorder %s260_s21, %s260_s21 }
  0x18   :  { %v51_v10 = vmax.bf16 %v215_v7, %v214_v6 }
  0x19   :  { %v54_v13 = vmax.bf16 %v217_v12, %v216_v11  ;;  %p267_p11 = por %p266_p10, %p265_p9 }
  0x1a   :  { %52 = vmax.xlane.bf16.xlu0 %v51_v10 }
  0x1b   :  { %p268_p12 = pnand %p267_p11, %p261_p8 }
  0x22   :  { %55 = vmax.xlane.bf16.xlu0 %v54_v13  ;;  %v119_v13 = vunpack.c.l.bf16 %v317_v5 }
  0xab   :  { %v53_v14 = vpop.xlane.xlu0 %52 }
  0xac   :  { %v57_v15 = vunpack.c.l.bf16 %v53_v14  ;;  %v58_v16 = vunpack.c.h.bf16 %v53_v14  ;;  %v120_v14 = vunpack.c.h.bf16 %v317_v5 }
  0xae   :  { %v61_v17 = vadd.f32 1e-30, %v57_v15  ;;  %v62_v18 = vadd.f32 1e-30, %v58_v16 }
  0xb0   :  { %v69_v19 = vshra.s32 %v61_v17, 23  ;;  %v70_v20 = vshra.s32 %v62_v18, 23 }
  0xb2   :  { %v73_v21 = vand.u32 255, %v69_v19  ;;  %v74_v22 = vand.u32 255, %v70_v20 }
  0xb3   :  { %v56_v23 = vpop.xlane.xlu0 %55 }
  0xb4   :  { %v218_v24 = vadd.s32 4294967169, %v73_v21  ;;  %v219_v25 = vadd.s32 4294967169, %v74_v22  ;;  %v59_v26 = vunpack.c.l.bf16 %v56_v23  ;;  %v60_v27 = vunpack.c.h.bf16 %v56_v23 }
  0xb6   :  { %v81_v28 = vsub.s32 10, %v218_v24  ;;  %v82_v29 = vsub.s32 10, %v219_v25  ;;  %v63_v32 = vadd.f32 1e-30, %v59_v26  ;;  %v64_v33 = vadd.f32 1e-30, %v60_v27 }
  0xb7   :  { %v222_v38 = vadd.s32 4294967286, %v218_v24  ;;  %v223_v39 = vadd.s32 4294967286, %v219_v25 }
  0xb8   :  { %v85_v36 = vadd.s32 127, %v81_v28  ;;  %v86_v37 = vadd.s32 127, %v82_v29  ;;  %v71_v40 = vshra.s32 %v63_v32, 23  ;;  %v72_v41 = vshra.s32 %v64_v33, 23 }
  0xb9   :  { %v101_v52 = vadd.s32 127, %v222_v38  ;;  %v102_v53 = vadd.s32 127, %v223_v39 }
  0xba   :  { %v89_v42 = vshll.u32 %v85_v36, 23  ;;  %v90_v43 = vshll.u32 %v86_v37, 23  ;;  %v75_v46 = vand.u32 255, %v71_v40  ;;  %v76_v47 = vand.u32 255, %v72_v41 }
  0xbb   :  { %v105_v0 = vshll.u32 %v101_v52, 23  ;;  %v106_v1 = vshll.u32 %v102_v53, 23 }
  0xbc   :  { %v121_v48 = vmul.f32 %v113_v30, %v89_v42  ;;  %v122_v49 = vmul.f32 %v114_v31, %v89_v42  ;;  %v123_v50 = vmul.f32 %v115_v34, %v90_v43  ;;  %v124_v51 = vmul.f32 %v116_v35, %v90_v43 }
  0xbd   :  { %v220_v54 = vadd.s32 4294967169, %v75_v46  ;;  %v221_v55 = vadd.s32 4294967169, %v76_v47 }
  0xbe   :  { %vm129_vm0 = vcmp.lt.f32.partialorder %v121_v48, 0.0  ;;  %vm130_vm1 = vcmp.lt.f32.partialorder %v122_v49, 0.0  ;;  %vm131_vm2 = vcmp.lt.f32.partialorder %v123_v50, 0.0  ;;  %vm132_vm3 = vcmp.lt.f32.partialorder %v124_v51, 0.0 }
  0xbf   :  { %v137_v56 = vceil.f32 %v121_v48  ;;  %v138_v57 = vceil.f32 %v122_v49  ;;  %v139_v58 = vceil.f32 %v123_v50  ;;  %v140_v59 = vceil.f32 %v124_v51 }
  0xc0   :  { %v145_v60 = vfloor.f32 %v121_v48  ;;  %v146_v61 = vfloor.f32 %v122_v49  ;;  %v147_v62 = vfloor.f32 %v123_v50  ;;  %v148_v63 = vfloor.f32 %v124_v51 }
  0xc1   :  { %v83_v2 = vsub.s32 10, %v220_v54  ;;  %v84_v3 = vsub.s32 10, %v221_v55  ;;  %v224_v17 = vadd.s32 4294967286, %v220_v54  ;;  %v225_v18 = vadd.s32 4294967286, %v221_v55 }
  0xc2   :  { %v153_v4 = vsel %vm129_vm0, %v137_v56, %v145_v60  ;;  %v154_v6 = vsel %vm130_vm1, %v138_v57, %v146_v61  ;;  %v155_v7 = vsel %vm131_vm2, %v139_v58, %v147_v62  ;;  %v156_v8 = vsel %vm132_vm3, %v140_v59, %v148_v63 }
  0xc3   :  { %v161_v9 = vmul.f32 %v153_v4, %v105_v0  ;;  %v162_v10 = vmul.f32 %v154_v6, %v105_v0  ;;  %v163_v11 = vmul.f32 %v155_v7, %v106_v1  ;;  %v164_v12 = vmul.f32 %v156_v8, %v106_v1 }
  0xc4   :  { %v87_v15 = vadd.s32 127, %v83_v2  ;;  %v88_v16 = vadd.s32 127, %v84_v3  ;;  %v103_v27 = vadd.s32 127, %v224_v17  ;;  %v104_v28 = vadd.s32 127, %v225_v18 }
  0xc5   :  { %v230_v19 = vpack.c.bf16 %v162_v10, %v161_v9  ;;  %v231_v20 = vpack.c.bf16 %v164_v12, %v163_v11 }
  0xc6   :  { %v91_v21 = vshll.u32 %v87_v15, 23  ;;  %v92_v22 = vshll.u32 %v88_v16, 23  ;;  %v107_v36 = vshll.u32 %v103_v27, 23  ;;  %v108_v37 = vshll.u32 %v104_v28, 23 }
  0xc7   :  { %193 = vst [vmem:[#allocation5] sm:$0xff] %v230_v19  ;;  %194 = vst [vmem:[#allocation5 + $0x8] sm:$0xff] %v231_v20 }
  0xc8   :  { %v125_v23 = vmul.f32 %v117_v44, %v91_v21  ;;  %v126_v24 = vmul.f32 %v118_v45, %v91_v21  ;;  %v127_v25 = vmul.f32 %v119_v13, %v92_v22  ;;  %v128_v26 = vmul.f32 %v120_v14, %v92_v22 }
  0xca   :  { %vm133_vm4 = vcmp.lt.f32.partialorder %v125_v23, 0.0  ;;  %vm134_vm5 = vcmp.lt.f32.partialorder %v126_v24, 0.0  ;;  %vm135_vm6 = vcmp.lt.f32.partialorder %v127_v25, 0.0  ;;  %vm136_vm7 = vcmp.lt.f32.partialorder %v128_v26, 0.0 }
  0xcb   :  { %v141_v5 = vceil.f32 %v125_v23  ;;  %v142_v29 = vceil.f32 %v126_v24  ;;  %v143_v30 = vceil.f32 %v127_v25  ;;  %v144_v31 = vceil.f32 %v128_v26 }
  0xcc   :  { %v149_v32 = vfloor.f32 %v125_v23  ;;  %v150_v33 = vfloor.f32 %v126_v24  ;;  %v151_v34 = vfloor.f32 %v127_v25  ;;  %v152_v35 = vfloor.f32 %v128_v26 }
  0xce   :  { %v157_v38 = vsel %vm133_vm4, %v141_v5, %v149_v32  ;;  %v158_v39 = vsel %vm134_vm5, %v142_v29, %v150_v33  ;;  %v159_v40 = vsel %vm135_vm6, %v143_v30, %v151_v34  ;;  %v160_v41 = vsel %vm136_vm7, %v144_v31, %v152_v35 }
  0xcf   :  { %v165_v42 = vmul.f32 %v157_v38, %v107_v36  ;;  %v166_v43 = vmul.f32 %v158_v39, %v107_v36  ;;  %v167_v44 = vmul.f32 %v159_v40, %v108_v37  ;;  %v168_v45 = vmul.f32 %v160_v41, %v108_v37 }
  0xd1   :  { %v232_v46 = vpack.c.bf16 %v166_v43, %v165_v42  ;;  %v233_v47 = vpack.c.bf16 %v168_v45, %v167_v44 }
  0xd3   :  { %195 = vst [vmem:[#allocation5 + $0x10] sm:$0xff] %v232_v46  ;;  %196 = vst [vmem:[#allocation5 + $0x18] sm:$0xff] %v233_v47 }
  0xd4   :  { %271 = shalt.err (!%p268_p12)
}
  0xd5   :  { %s272_s24 = scalar_lea.hbm %s345_s1, 512 }
  0xd6   :  { %p273_p13 = scmp.ne.s32.totalorder %s345_s1, %s272_s24  ;;  %p276_p0 = scmp.lt.u32.totalorder %s272_s24, %s345_s1 }
  0xd8   :  { %p278_p1 = pnand %p276_p0, %p273_p13 }
  0xda   :  { %281 = shalt.err (!%p278_p1)
}
  0xdb   :  { %208 = dma.vmem_to_hbm [thread:$0]  %s203_s20, 512, %s345_s1, [#allocation4], %s287_s16, %s287_s16, %s288_s17  }
  0xdc   :  { %284 = dma.done.wait [#allocation4], 512  }
  0xdd   :  { %285 = vsyncadd [#allocation4], 4294966784 }
  0xde   :  { %212 = vsyncpa [#allocation3], 1 }
  0xdf   :  { %213 = vsyncpa [#allocation4], 1 }

</bundles_post_ra>
